<compile_context>
chip_gen: v7x
topology: tpu7x:2x2x1
jax: 0.10.0
libtpu: 0.0.40
codegen_flags: <defaults>
</compile_context>

<pallas_src>
import functools

import jax
import jax.numpy as jnp
from jax.experimental import pallas as pl
from jax.experimental.pallas import tpu as pltpu


def _round_up(x, m):
    return ((x + m - 1) // m) * m


def _conv_tile(x_cur_ref, x_halo_ref, w_ref, *, tile_l, kernel_size, dilation, cin):
    """Dilated conv for one L-tile -> (cout_p, tile_l) f32.

    x_cur_ref : (1, Cin, tile_l)      bf16  current L-tile
    x_halo_ref: (1, Cin, halo_block)  bf16  right halo lanes
    w_ref     : (cout_p, K*Cin)       bf16  im2col weight; column k*Cin + c
    """
    xw = jnp.concatenate([x_cur_ref[0], x_halo_ref[0]], axis=-1)
    if cin >= 256:
        # Large per-tap contraction: K accumulated matmuls avoid materializing
        # the (K*Cin, tile_l) im2col temp (saves VMEM + vst slots, esp. v5e).
        acc = jnp.zeros((w_ref.shape[0], tile_l), jnp.float32)
        for k in range(kernel_size):
            acc = acc + jnp.dot(
                w_ref[:, k * cin:(k + 1) * cin],
                xw[:, k * dilation:k * dilation + tile_l],
                preferred_element_type=jnp.float32)
        return acc
    # Small Cin: im2col so the MXU contraction is K*Cin instead of Cin.
    xcol = jnp.concatenate(
        [xw[:, k * dilation:k * dilation + tile_l] for k in range(kernel_size)],
        axis=0)                                            # (K*Cin, tile_l)
    return jnp.dot(w_ref[...], xcol, preferred_element_type=jnp.float32)


def _accum_stats(y, t, c_ref, s_ref, ss_ref, *, tile_l, out_len):
    """Shifted-sum BN statistics, accumulated in resident blocks across t.

    c_ref holds a per-channel shift (mean of tile 0 of this batch element) so
    the running sums stay centered -> no E[x^2]-mean^2 cancellation.
    """
    lane = jax.lax.broadcasted_iota(jnp.int32, y.shape, 1)
    valid = (t * tile_l + lane) < out_len

    @pl.when(t == 0)
    def _():
        n0 = jnp.float32(min(tile_l, out_len))
        y0 = jnp.where(valid, y, 0.0)
        c_ref[...] = (jnp.sum(y0, axis=1, keepdims=True) / n0)[None]
        s_ref[...] = jnp.zeros_like(s_ref)
        ss_ref[...] = jnp.zeros_like(ss_ref)

    yc = jnp.where(valid, y - c_ref[0], 0.0)
    s_ref[...] += jnp.sum(yc, axis=1, keepdims=True)[None]
    ss_ref[...] += jnp.sum(yc * yc, axis=1, keepdims=True)[None]


def _conv_stats_kernel(x_cur_ref, x_halo_ref, w_ref, c_ref, s_ref, ss_ref, *,
                       tile_l, kernel_size, dilation, cin, out_len):
    """Pass 1 (small K*Cin): conv + accumulated per-channel statistics."""
    y = _conv_tile(x_cur_ref, x_halo_ref, w_ref, tile_l=tile_l,
                   kernel_size=kernel_size, dilation=dilation, cin=cin)
    _accum_stats(y, pl.program_id(1), c_ref, s_ref, ss_ref,
                 tile_l=tile_l, out_len=out_len)


def _conv_y_stats_kernel(x_cur_ref, x_halo_ref, w_ref, y_ref, c_ref, s_ref,
                         ss_ref, *, tile_l, kernel_size, dilation, cin, out_len):
    """Pass 1 (large K*Cin): conv, store y (bf16, lane-dense NCL) + statistics."""
    y = _conv_tile(x_cur_ref, x_halo_ref, w_ref, tile_l=tile_l,
                   kernel_size=kernel_size, dilation=dilation, cin=cin)
    y_ref[...] = y[None].astype(y_ref.dtype)
    _accum_stats(y, pl.program_id(1), c_ref, s_ref, ss_ref,
                 tile_l=tile_l, out_len=out_len)


def _conv_bn_relu_kernel(x_cur_ref, x_halo_ref, w_ref, scale_ref, shift_ref,
                         out_ref, *, tile_l, kernel_size, dilation, cin):
    """Pass 2 (recompute path): conv + fused scale/shift + ReLU."""
    y = _conv_tile(x_cur_ref, x_halo_ref, w_ref, tile_l=tile_l,
                   kernel_size=kernel_size, dilation=dilation, cin=cin)
    out_ref[...] = jnp.maximum(y * scale_ref[...] + shift_ref[...],
                               0.0)[None].astype(out_ref.dtype)


def _bn_relu_kernel(y_ref, scale_ref, shift_ref, out_ref):
    """Pass 2 (stored-y path): pure elementwise scale/shift + ReLU."""
    y = y_ref[...].astype(jnp.float32)
    out_ref[...] = jnp.maximum(y * scale_ref[...] + shift_ref[...],
                               0.0).astype(out_ref.dtype)


def tdnn_block_forward(x_ncl, weight_oik, bias, gamma, beta, *, dilation, eps=1e-5):
    """x_ncl: (B, Cin, L) like the PyTorch module. Returns (B, Cout, L_out)."""
    del bias  # exactly cancelled by training-mode BN mean subtraction
    B, Cin, L = x_ncl.shape
    Cout, Cin_w, K = weight_oik.shape
    assert Cin == Cin_w

    # speechbrain "same" padding (stride=1): floor(dilation*(K-1)/2) each side,
    # reflect mode.  out_len == L for odd K.
    pad = (dilation * (K - 1)) // 2
    halo = dilation * (K - 1)
    out_len = L + 2 * pad - halo

    # ---- L tiling: big lane-dense tiles; narrow 128-lane-granular halo. ----
    tile_l = min(_round_up(out_len, 128), 512)
    if out_len >= 4096 and Cin * 1024 * 2 <= 2 * 1024 * 1024:
        tile_l = 1024                      # long sequences, small input tiles
    assert halo <= tile_l, "kernel receptive field must fit within one tile"
    n_t = pl.cdiv(out_len, tile_l)
    halo_block = _round_up(max(halo, 1), 128)
    if tile_l % halo_block != 0:
        halo_block = tile_l                # rare fallback: full-tile halo
    l_pad_out = n_t * tile_l
    l_pad_in = l_pad_out + halo_block

    # MXU-friendly output-row padding (sublane axis).
    cout_p = _round_up(Cout, 8) if Cout < 128 else _round_up(Cout, 128)

    # Host-side prep: bf16 cast fused into the pads; minimal extra length.
    xpad = jnp.pad(x_ncl.astype(jnp.bfloat16), ((0, 0), (0, 0), (pad, pad)),
                   mode='reflect')
    xpad = jnp.pad(xpad, ((0, 0), (0, 0), (0, l_pad_in - (L + 2 * pad))))

    # Weight in im2col layout (cout_p, K*Cin): column k*Cin + c = weight[o, c, k].
    w2 = jnp.transpose(weight_oik, (0, 2, 1)).reshape(Cout, K * Cin)
    w2 = jnp.pad(w2, ((0, cout_p - Cout), (0, 0))).astype(jnp.bfloat16)

    # ---- specs ----
    grid = (B, n_t)
    hpt = tile_l // halo_block             # halo blocks per tile
    x_cur_spec = pl.BlockSpec((1, Cin, tile_l), lambda b, t: (b, 0, t))
    x_halo_spec = pl.BlockSpec((1, Cin, halo_block),
                               lambda b, t: (b, 0, (t + 1) * hpt))
    w_spec = pl.BlockSpec((cout_p, K * Cin), lambda b, t: (0, 0))
    vec_spec = pl.BlockSpec((cout_p, 1), lambda b, t: (0, 0))
    stat_spec = pl.BlockSpec((1, cout_p, 1), lambda b, t: (b, 0, 0))
    y_spec = pl.BlockSpec((1, cout_p, tile_l), lambda b, t: (b, 0, t))
    out_spec = pl.BlockSpec((1, cout_p, tile_l), lambda b, t: (b, 0, t))

    # NOTE: weight/vec specs have constant index maps; pl.Buffered(1) would
    # halve their VMEM footprint on v7x but is left at the default here.
    cparams_acc = pltpu.CompilerParams(
        dimension_semantics=("parallel", "arbitrary"),   # B parallel (megacore)
        vmem_limit_bytes=32 * 1024 * 1024)
    cparams_par = pltpu.CompilerParams(
        dimension_semantics=("parallel", "parallel"),
        vmem_limit_bytes=32 * 1024 * 1024)

    conv_flops = 2 * B * n_t * tile_l * (K * Cin) * cout_p
    x_bytes = B * Cin * (l_pad_out + n_t * halo_block) * 2
    w_bytes = cout_p * K * Cin * 2
    y_bytes = B * cout_p * l_pad_out * 2
    o_bytes = B * cout_p * l_pad_out * 4
    stat_shapes = [jax.ShapeDtypeStruct((B, cout_p, 1), jnp.float32)] * 3

    store_y = (K * Cin) >= 512             # big contraction: avoid recompute

    # ---- Pass 1: conv (+ optional y store) + accumulated batch statistics. ----
    if store_y:
        y_conv, c_st, s_st, ss_st = pl.pallas_call(
            functools.partial(_conv_y_stats_kernel, tile_l=tile_l, kernel_size=K,
                              dilation=dilation, cin=Cin, out_len=out_len),
            grid=grid,
            in_specs=[x_cur_spec, x_halo_spec, w_spec],
            out_specs=[y_spec] + [stat_spec] * 3,
            out_shape=[jax.ShapeDtypeStruct((B, cout_p, l_pad_out), jnp.bfloat16)]
                      + stat_shapes,
            compiler_params=cparams_acc,
            cost_estimate=pl.CostEstimate(flops=conv_flops, transcendentals=0,
                                          bytes_accessed=x_bytes + w_bytes + y_bytes),
        )(xpad, xpad, w2)
    else:
        c_st, s_st, ss_st = pl.pallas_call(
            functools.partial(_conv_stats_kernel, tile_l=tile_l, kernel_size=K,
                              dilation=dilation, cin=Cin, out_len=out_len),
            grid=grid,
            in_specs=[x_cur_spec, x_halo_spec, w_spec],
            out_specs=[stat_spec] * 3,
            out_shape=stat_shapes,
            compiler_params=cparams_acc,
            cost_estimate=pl.CostEstimate(flops=conv_flops, transcendentals=0,
                                          bytes_accessed=x_bytes + w_bytes),
        )(xpad, xpad, w2)

    # ---- Combine per-batch shifted sums (Chan) and fold BN into scale/shift. ----
    cnt = jnp.float32(out_len)
    c_b, s_b, ss_b = c_st[:, :, 0], s_st[:, :, 0], ss_st[:, :, 0]
    mean_b = c_b + s_b / cnt                                  # (B, cout_p)
    m2_b = jnp.maximum(ss_b - s_b * s_b / cnt, 0.0)           # per-batch sum sq dev
    mean = jnp.mean(mean_b, axis=0)                           # equal counts per b
    m2 = jnp.sum(m2_b + cnt * (mean_b - mean) ** 2, axis=0)
    var = jnp.maximum(m2 / jnp.float32(B * out_len), 0.0)     # biased (training BN)
    inv = jax.lax.rsqrt(var + eps)
    gamma_p = jnp.pad(gamma, (0, cout_p - Cout)).astype(jnp.float32)
    beta_p = jnp.pad(beta, (0, cout_p - Cout)).astype(jnp.float32)
    scale = (gamma_p * inv).reshape(cout_p, 1)
    shift = (beta_p - mean * gamma_p * inv).reshape(cout_p, 1)

    # ---- Pass 2: normalize + ReLU, lane-dense NCL tiles. ----
    out_shape = jax.ShapeDtypeStruct((B, cout_p, l_pad_out), jnp.float32)
    if store_y:
        out = pl.pallas_call(
            _bn_relu_kernel,
            grid=grid,
            in_specs=[y_spec, vec_spec, vec_spec],
            out_specs=out_spec,
            out_shape=out_shape,
            compiler_params=cparams_par,
            cost_estimate=pl.CostEstimate(flops=2 * B * cout_p * l_pad_out,
                                          transcendentals=0,
                                          bytes_accessed=y_bytes + o_bytes),
        )(y_conv, scale, shift)
    else:
        out = pl.pallas_call(
            functools.partial(_conv_bn_relu_kernel, tile_l=tile_l, kernel_size=K,
                              dilation=dilation, cin=Cin),
            grid=grid,
            in_specs=[x_cur_spec, x_halo_spec, w_spec, vec_spec, vec_spec],
            out_specs=out_spec,
            out_shape=out_shape,
            compiler_params=cparams_par,
            cost_estimate=pl.CostEstimate(flops=conv_flops, transcendentals=0,
                                          bytes_accessed=x_bytes + w_bytes + o_bytes),
        )(xpad, xpad, w2, scale, shift)

    if cout_p == Cout and l_pad_out == out_len:
        return out
    return out[:, :Cout, :out_len]


def _reference(x, w, b, g, be, dilation, eps=1e-5):
    """Pure-JAX f32 reference of the same forward pass."""
    Cout, Cin, K = w.shape
    pad = (dilation * (K - 1)) // 2
    xp = jnp.pad(x, ((0, 0), (0, 0), (pad, pad)), mode='reflect')
    out_len = x.shape[2] + 2 * pad - dilation * (K - 1)
    y = jnp.zeros((x.shape[0], Cout, out_len), jnp.float32)
    for k in range(K):
        xs = jax.lax.slice_in_dim(xp, k * dilation, k * dilation + out_len, axis=2)
        y = y + jnp.einsum('oc,bcl->bol', w[:, :, k], xs)
    y = y + b[None, :, None]
    mean = jnp.mean(y, axis=(0, 2), keepdims=True)
    var = jnp.mean((y - mean) ** 2, axis=(0, 2), keepdims=True)
    yn = (y - mean) * jax.lax.rsqrt(var + eps) * g[None, :, None] + be[None, :, None]
    return jnp.maximum(yn, 0.0)


def _run_case(B, Cin, Cout, L, K, dilation, tol):
    key = jax.random.PRNGKey(0)
    kx, kw, kb, kg, kbe = jax.random.split(key, 5)
    x = jax.random.normal(kx, (B, Cin, L), dtype=jnp.float32)          # NCL
    weight = jax.random.normal(kw, (Cout, Cin, K), dtype=jnp.float32) * 0.1
    bias = jax.random.normal(kb, (Cout,), dtype=jnp.float32) * 0.1
    gamma = 1.0 + 0.1 * jax.random.normal(kg, (Cout,), dtype=jnp.float32)
    beta = 0.1 * jax.random.normal(kbe, (Cout,), dtype=jnp.float32)

    out = tdnn_block_forward(x, weight, bias, gamma, beta, dilation=dilation)
    out = jax.block_until_ready(out)
    assert out.shape == (B, Cout, L), out.shape

    ref = _reference(x, weight, bias, gamma, beta, dilation)
    err = float(jnp.max(jnp.abs(out - ref)))
    # bf16 MXU operands (f32 accumulation) -> tolerance scales mildly with K*Cin.
    assert err < tol, f"max abs error {err} (tol {tol})"


if __name__ == "__main__":
    # Case 1: tiny K*Cin -> conv-recompute path (im2col, single tile).
    _run_case(B=2, Cin=16, Cout=16, L=32, K=3, dilation=2, tol=5e-2)
    # Case 2: larger K*Cin -> stored-y path, multi-tile L, narrow halo stream.
    _run_case(B=2, Cin=128, Cout=96, L=700, K=5, dilation=3, tol=1e-1)
    print("KERNEL_OK")
</pallas_src>

<mosaic_0001>
module attributes {stable_mosaic.version = 11 : i64} {
  func.func @_conv_stats_kernel(%arg0: i32, %arg1: i32, %arg2: memref<1x16x128xbf16, #tpu.memory_space<vmem>>, %arg3: memref<1x16x128xbf16, #tpu.memory_space<vmem>>, %arg4: memref<16x48xbf16, #tpu.memory_space<vmem>>, %arg5: memref<1x16x1xf32, #tpu.memory_space<vmem>>, %arg6: memref<1x16x1xf32, #tpu.memory_space<vmem>>, %arg7: memref<1x16x1xf32, #tpu.memory_space<vmem>>) attributes {dimension_semantics = [#tpu.dimension_semantics<parallel>, #tpu.dimension_semantics<arbitrary>], iteration_bounds = array<i64: 2, 1>, scalar_prefetch = 0 : i64, scratch_operands = 0 : i64, tpu.core_type = #tpu.core_type<tc>, window_params = [{transform_indices = @transform_0, window_bounds = array<i64: 1, 16, 128>}, {transform_indices = @transform_1, window_bounds = array<i64: 1, 16, 128>}, {pipeline_mode = #tpu.pipeline_mode<synchronous>, transform_indices = @transform_2, window_bounds = array<i64: 16, 48>}, {transform_indices = @transform_3, window_bounds = array<i64: 1, 16, 1>}, {transform_indices = @transform_4, window_bounds = array<i64: 1, 16, 1>}, {transform_indices = @transform_5, window_bounds = array<i64: 1, 16, 1>}]} {
    %c0 = arith.constant 0 : index
    %c0_0 = arith.constant 0 : index
    %c0_1 = arith.constant 0 : index
    %0 = vector.load %arg2[%c0, %c0_0, %c0_1] : memref<1x16x128xbf16, #tpu.memory_space<vmem>>, vector<1x16x128xbf16>
    %1 = vector.shape_cast %0 : vector<1x16x128xbf16> to vector<16x128xbf16>
    %c0_2 = arith.constant 0 : index
    %c0_3 = arith.constant 0 : index
    %c0_4 = arith.constant 0 : index
    %2 = vector.load %arg3[%c0_2, %c0_3, %c0_4] : memref<1x16x128xbf16, #tpu.memory_space<vmem>>, vector<1x16x128xbf16>
    %3 = vector.shape_cast %2 : vector<1x16x128xbf16> to vector<16x128xbf16>
    %4 = tpu.concatenate %1, %3 in 1 : vector<16x128xbf16>, vector<16x128xbf16> -> vector<16x256xbf16>
    %5 = vector.extract_strided_slice %4 {offsets = [0, 0], sizes = [16, 128], strides = [1, 1]} : vector<16x256xbf16> to vector<16x128xbf16>
    %6 = vector.extract_strided_slice %4 {offsets = [0, 2], sizes = [16, 128], strides = [1, 1]} : vector<16x256xbf16> to vector<16x128xbf16>
    %7 = vector.extract_strided_slice %4 {offsets = [0, 4], sizes = [16, 128], strides = [1, 1]} : vector<16x256xbf16> to vector<16x128xbf16>
    %8 = tpu.concatenate %5, %6, %7 in 0 : vector<16x128xbf16>, vector<16x128xbf16>, vector<16x128xbf16> -> vector<48x128xbf16>
    %c0_5 = arith.constant 0 : index
    %c0_6 = arith.constant 0 : index
    %9 = vector.load %arg4[%c0_5, %c0_6] : memref<16x48xbf16, #tpu.memory_space<vmem>>, vector<16x48xbf16>
    %cst = arith.constant dense<0.000000e+00> : vector<16x128xf32>
    %10 = tpu.matmul %9, %8, %cst {dimension_numbers = #tpu.dot_dimension_numbers<[1], [0], [0], [1], [0, 0, 1, 1], [], []>} : vector<16x48xbf16>, vector<48x128xbf16>, vector<16x128xf32> -> vector<16x128xf32>
    %11 = tpu.iota {dimensions = array<i32: 1>} : vector<16x128xi32>
    %c128_i32 = arith.constant 128 : i32
    %12 = arith.muli %arg1, %c128_i32 : i32
    %13 = vector.broadcast %12 : i32 to vector<16x128xi32>
    %14 = arith.addi %13, %11 : vector<16x128xi32>
    %c32_i32 = arith.constant 32 : i32
    %15 = vector.broadcast %c32_i32 : i32 to vector<16x128xi32>
    %16 = arith.cmpi slt, %14, %15 : vector<16x128xi32>
    %c0_i32 = arith.constant 0 : i32
    %17 = arith.cmpi eq, %arg1, %c0_i32 : i32
    %18 = arith.extui %17 : i1 to i32
    %c0_i32_7 = arith.constant 0 : i32
    %19 = arith.cmpi ne, %18, %c0_i32_7 : i32
    scf.if %19 {
      %cst_26 = arith.constant 0.000000e+00 : f32
      %39 = vector.broadcast %cst_26 : f32 to vector<16x128xf32>
      %40 = arith.select %16, %10, %39 : vector<16x128xi1>, vector<16x128xf32>
      %cst_27 = arith.constant dense<0.000000e+00> : vector<16xf32>
      %41 = vector.multi_reduction <add>, %40, %cst_27 [1] : vector<16x128xf32> to vector<16xf32>
      %42 = vector.shape_cast %41 : vector<16xf32> to vector<16x1xf32>
      %cst_28 = arith.constant 3.200000e+01 : f32
      %43 = vector.broadcast %cst_28 : f32 to vector<16x1xf32>
      %44 = arith.divf %42, %43 : vector<16x1xf32>
      %45 = vector.shape_cast %44 : vector<16x1xf32> to vector<1x16x1xf32>
      %c0_29 = arith.constant 0 : index
      %c0_30 = arith.constant 0 : index
      %c0_31 = arith.constant 0 : index
      %46 = vector.load %arg5[%c0_29, %c0_30, %c0_31] : memref<1x16x1xf32, #tpu.memory_space<vmem>>, vector<1x16x1xf32>
      tpu.vector_store %arg5[%c0_29, %c0_30, %c0_31], %45 {strides = array<i32>} : memref<1x16x1xf32, #tpu.memory_space<vmem>>, vector<1x16x1xf32>,
      %cst_32 = arith.constant 0.000000e+00 : f32
      %47 = vector.broadcast %cst_32 : f32 to vector<1x16x1xf32>
      %c0_33 = arith.constant 0 : index
      %c0_34 = arith.constant 0 : index
      %c0_35 = arith.constant 0 : index
      %48 = vector.load %arg6[%c0_33, %c0_34, %c0_35] : memref<1x16x1xf32, #tpu.memory_space<vmem>>, vector<1x16x1xf32>
      tpu.vector_store %arg6[%c0_33, %c0_34, %c0_35], %47 {strides = array<i32>} : memref<1x16x1xf32, #tpu.memory_space<vmem>>, vector<1x16x1xf32>,
      %cst_36 = arith.constant 0.000000e+00 : f32
      %49 = vector.broadcast %cst_36 : f32 to vector<1x16x1xf32>
      %c0_37 = arith.constant 0 : index
      %c0_38 = arith.constant 0 : index
      %c0_39 = arith.constant 0 : index
      %50 = vector.load %arg7[%c0_37, %c0_38, %c0_39] : memref<1x16x1xf32, #tpu.memory_space<vmem>>, vector<1x16x1xf32>
      tpu.vector_store %arg7[%c0_37, %c0_38, %c0_39], %49 {strides = array<i32>} : memref<1x16x1xf32, #tpu.memory_space<vmem>>, vector<1x16x1xf32>,
    } else {
    }
    %c0_8 = arith.constant 0 : index
    %c0_9 = arith.constant 0 : index
    %c0_10 = arith.constant 0 : index
    %20 = vector.load %arg5[%c0_8, %c0_9, %c0_10] : memref<1x16x1xf32, #tpu.memory_space<vmem>>, vector<1x16x1xf32>
    %21 = vector.shape_cast %20 : vector<1x16x1xf32> to vector<16x1xf32>
    %22 = vector.broadcast %21 : vector<16x1xf32> to vector<16x128xf32>
    %23 = arith.subf %10, %22 : vector<16x128xf32>
    %cst_11 = arith.constant 0.000000e+00 : f32
    %24 = vector.broadcast %cst_11 : f32 to vector<16x128xf32>
    %25 = arith.select %16, %23, %24 : vector<16x128xi1>, vector<16x128xf32>
    %c0_12 = arith.constant 0 : index
    %c0_13 = arith.constant 0 : index
    %c0_14 = arith.constant 0 : index
    %26 = vector.load %arg6[%c0_12, %c0_13, %c0_14] : memref<1x16x1xf32, #tpu.memory_space<vmem>>, vector<1x16x1xf32>
    %cst_15 = arith.constant dense<0.000000e+00> : vector<16xf32>
    %27 = vector.multi_reduction <add>, %25, %cst_15 [1] : vector<16x128xf32> to vector<16xf32>
    %28 = vector.shape_cast %27 : vector<16xf32> to vector<16x1xf32>
    %29 = vector.shape_cast %28 : vector<16x1xf32> to vector<1x16x1xf32>
    %30 = arith.addf %26, %29 : vector<1x16x1xf32>
    %c0_16 = arith.constant 0 : index
    %c0_17 = arith.constant 0 : index
    %c0_18 = arith.constant 0 : index
    %31 = vector.load %arg6[%c0_16, %c0_17, %c0_18] : memref<1x16x1xf32, #tpu.memory_space<vmem>>, vector<1x16x1xf32>
    tpu.vector_store %arg6[%c0_16, %c0_17, %c0_18], %30 {strides = array<i32>} : memref<1x16x1xf32, #tpu.memory_space<vmem>>, vector<1x16x1xf32>,
    %c0_19 = arith.constant 0 : index
    %c0_20 = arith.constant 0 : index
    %c0_21 = arith.constant 0 : index
    %32 = vector.load %arg7[%c0_19, %c0_20, %c0_21] : memref<1x16x1xf32, #tpu.memory_space<vmem>>, vector<1x16x1xf32>
    %33 = arith.mulf %25, %25 : vector<16x128xf32>
    %cst_22 = arith.constant dense<0.000000e+00> : vector<16xf32>
    %34 = vector.multi_reduction <add>, %33, %cst_22 [1] : vector<16x128xf32> to vector<16xf32>
    %35 = vector.shape_cast %34 : vector<16xf32> to vector<16x1xf32>
    %36 = vector.shape_cast %35 : vector<16x1xf32> to vector<1x16x1xf32>
    %37 = arith.addf %32, %36 : vector<1x16x1xf32>
    %c0_23 = arith.constant 0 : index
    %c0_24 = arith.constant 0 : index
    %c0_25 = arith.constant 0 : index
    %38 = vector.load %arg7[%c0_23, %c0_24, %c0_25] : memref<1x16x1xf32, #tpu.memory_space<vmem>>, vector<1x16x1xf32>
    tpu.vector_store %arg7[%c0_23, %c0_24, %c0_25], %37 {strides = array<i32>} : memref<1x16x1xf32, #tpu.memory_space<vmem>>, vector<1x16x1xf32>,
    return
  }
  func.func @transform_0(%arg0: i32, %arg1: i32) -> (i32, i32, i32) {
    %c0_i32 = arith.constant 0 : i32
    %c0_i32_0 = arith.constant 0 : i32
    return %arg0, %c0_i32, %arg1 : i32, i32, i32
  }
  func.func @transform_1(%arg0: i32, %arg1: i32) -> (i32, i32, i32) {
    %c1_i32 = arith.constant 1 : i32
    %0 = arith.addi %arg1, %c1_i32 : i32
    %c1_i32_0 = arith.constant 1 : i32
    %1 = arith.muli %0, %c1_i32_0 : i32
    %c0_i32 = arith.constant 0 : i32
    %c0_i32_1 = arith.constant 0 : i32
    return %arg0, %c0_i32, %1 : i32, i32, i32
  }
  func.func @transform_2(%arg0: i32, %arg1: i32) -> (i32, i32) {
    %c0_i32 = arith.constant 0 : i32
    %c0_i32_0 = arith.constant 0 : i32
    %c0_i32_1 = arith.constant 0 : i32
    return %c0_i32, %c0_i32_0 : i32, i32
  }
  func.func @transform_3(%arg0: i32, %arg1: i32) -> (i32, i32, i32) {
    %c0_i32 = arith.constant 0 : i32
    %c0_i32_0 = arith.constant 0 : i32
    %c0_i32_1 = arith.constant 0 : i32
    return %arg0, %c0_i32, %c0_i32_0 : i32, i32, i32
  }
  func.func @transform_4(%arg0: i32, %arg1: i32) -> (i32, i32, i32) {
    %c0_i32 = arith.constant 0 : i32
    %c0_i32_0 = arith.constant 0 : i32
    %c0_i32_1 = arith.constant 0 : i32
    return %arg0, %c0_i32, %c0_i32_0 : i32, i32, i32
  }
  func.func @transform_5(%arg0: i32, %arg1: i32) -> (i32, i32, i32) {
    %c0_i32 = arith.constant 0 : i32
    %c0_i32_0 = arith.constant 0 : i32
    %c0_i32_1 = arith.constant 0 : i32
    return %arg0, %c0_i32, %c0_i32_0 : i32, i32, i32
  }
}

</mosaic_0001>

<bundles_post_ra>
// kernel: tpu_custom_call.1
= control target key start
LH: loop header
LB: loop body
LE: loop exit
PB: predicated region body
PF: predicated region fallthrough
CT: control target
= control target key end

     0   :  { %s1245_s0 = inlined_call_operand.hbm [shape: bf16[2,16,256], index: 0, kind: input, shape index: {}]   ;;  %s1246_s1 = inlined_call_operand.hbm [shape: bf16[2,16,256], index: 1, kind: input, shape index: {}]   ;;  %s1247_s2 = inlined_call_operand.hbm [shape: bf16[16,48], index: 2, kind: input, shape index: {}]   ;;  %s1248_s3 = inlined_call_operand.vmem [shape: f32[2,16,1], index: 3, kind: output, shape index: {0}]   ;;  %s1249_s4 = inlined_call_operand.vmem [shape: f32[2,16,1], index: 4, kind: output, shape index: {1}]   ;;  %s1250_s5 = inlined_call_operand.vmem [shape: f32[2,16,1], index: 5, kind: output, shape index: {2}]  }
   0x1   :  { %1259 = sst [smem:[#allocation11_spill]] %s1245_s0 }
   0x2   :  { %1260 = sst [smem:[#allocation12_spill]] %s1247_s2 }
   0x3   :  { %11 = vsyncpa [#allocation3], 0 }
   0x4   :  { %13 = vsyncpa [#allocation3 + $0x1], 0 }
   0x5   :  { %14 = vsyncpa [#allocation5], 0 }
   0x6   :  { %16 = vsyncpa [#allocation5 + $0x1], 0  ;;  %s991_s18 = smov 0   ;;  %s993_s19 = smov 0  }
   0x7   :  { %s995_s20 = smov 0   ;;  %s997_s21 = smov 0  }
   0x8   :  { %s999_s22 = smov 0   ;;  %s1001_s23 = smov 0  }
   0x9 LB: > { %s1256_s24 = sadd.s32 4294967295, %s948_s23   ;;  %s43_s25 = sadd.s32 1, %s936_s20  ;;  %s948_s23 = sphi %s1001_s23, %s22_s23   ;;  %s944_s22 = sphi %s999_s22, %s1280_s22   ;;  %s940_s21 = sphi %s997_s21, %s1279_s21   ;;  %s936_s20 = sphi %s995_s20, %s1278_s20   ;;  %s932_s19 = sphi %s993_s19, %s1277_s19   ;;  %s928_s18 = sphi %s991_s18, %s1276_s18  }
   0xa   : > { %p50_p0 = scmp.ne.s32.totalorder %s936_s20, %s932_s19  ;;  %p51_p1 = scmp.eq.s32.totalorder %s948_s23, 0 }
   0xb   : > { %p56_p2 = scmp.ne.s32.totalorder %s932_s19, %s928_s18  ;;  %p1027_p3 = scmp.eq.s32.totalorder %s1256_s24, 0 }
   0xc   : > { %p52_p4 = por %p51_p1, %p50_p0  ;;  %p673_p5 = scmp.ge.s32.totalorder %s948_s23, 1 }
   0xd   : > { %s1261_s26 = scalar_select %p1027_p3, 1, 0 }
   0xe   : > { %p1034_p6 = por %p1027_p3, %p56_p2  ;;  %p196_p7 = scmp.lt.s32.totalorder %s948_s23, 3 }
   0xf   : > { %s950_s29 = smov [#allocation6]   ;;  %p737_p10 = scmp.lt.s32.totalorder %s948_s23, 2 }
  0x10   : > { %s1262_s27 = scalar_select %p1034_p6, 1, 0 }
  0x11   : > { %p1039_p8 = pnand %p673_p5, %p196_p7  ;;  %s208_s30 = sshll.u32 %s950_s29, 4  ;;  %s209_s30 = int_to_ptr.vmem [resolvable:$true] %s208_s30 }
  0x12   : > { %p1052_p12 = pnand %p737_p10, %p52_p4  ;;  %s34_s8 = sadd.s32 1, %s944_s22 }
  0x13   : > { %s1263_s28 = scalar_select %p1039_p8, 1, 0 }
  0x14   : > { %p725_p9 = pneg %p1039_p8  ;;  %s1266_s2 = sld [smem:[#allocation12_spill]] }
  0x15   : > { %s1265_s7 = scalar_select %p1052_p12, 1, 0 }
  0x16   : > { %p1048_p11 = pnand %p725_p9, %p1027_p3 }
  0x18   : > { %p803_p0 = pneg %p1048_p11 }
  0x1a   : > { %s801_s11 = scalar_lea.hbm %s1266_s2, 128 }
  0x1b   : > { %p802_p13 = scmp.ne.s32.totalorder %s1266_s2, %s801_s11  ;;  %p808_p4 = scmp.lt.u32.totalorder %s801_s11, %s1266_s2 }
  0x1d   : > { %p804_p1 = pnand %p803_p0, %p802_p13 }
  0x1f   : > { %p805_p2 = pneg %p804_p1 }
  0x21   : > { %p810_p5 = pnand %p808_p4, %p805_p2 }
  0x23   : > { %813 = shalt.err (!%p810_p5)
}
  0x24   : > { %s814_s16 = scalar_lea.vmem %s209_s30, 128  ;;  %p822_p3 = scmp.lt.s32.totalorder %s209_s30, %s209_s30 }
  0x25   : > { %p815_p7 = scmp.ne.s32.totalorder %s209_s30, %s814_s16  ;;  %p823_p6 = scmp.lt.s32.totalorder %s814_s16, %s814_s16 }
  0x27   : > { %p817_p9 = pnand %p815_p7, %p803_p0  ;;  %p824_p8 = por %p823_p6, %p822_p3 }
  0x29   : > { %p818_p10 = pneg %p817_p9 }
  0x2b   : > { %p825_p12 = pnand %p824_p8, %p818_p10 }
  0x2d   : > { %828 = shalt.err (!%p825_p12)
}
  0x2e   : > { %s951_s17 = smov 64   ;;  %s952_s18 = smov 4  }
  0x2f   : > { %728 = dma.hbm_to_vmem [thread:$0]  (!%p1048_p11), %s1266_s2, 128, %s209_s30, [#allocation5], %s951_s17, %s951_s17, %s952_s18  }
  0x30   : > { %p36_p3 = scmp.ge.s32.totalorder %s34_s8, 2  ;;  %s222_s10 = sand.u32 1, %s936_s20  }
  0x31   : > { %s1257_s11 = sshll.u32 %s944_s22, 8  ;;  %s1080_s12 = sshll.u32 %s222_s10, 3 }
  0x32   : > { %s1282_s8 = smov (%p36_p3, %s34_s8), 0  ;;  %s1268_s0 = sld [smem:[#allocation11_spill]] }
  0x33   : > { %1267 = sst [smem:[#allocation10_spill]] %s1282_s8  ;;  %s38_s13 = ssub.s32 %s944_s22, %s1282_s8 }
  0x34   : > { %p41_p6 = scmp.eq.s32.totalorder %s38_s13, 0  ;;  %s226_s30 = scalar_lea.vmem [#allocation2], %s1080_s12 }
  0x35   : > { %s234_s16 = sshll.u32 %s226_s30, 4  ;;  %s1099_s9 = scalar_lea.sflag [#allocation3], %s222_s10  ;;  %s1097_s16 = int_to_ptr.vmem [resolvable:$true] %s234_s16 }
  0x36   : > { %s1095_s29 = scalar_select %p41_p6, %s936_s20, %s43_s25  }
  0x37   : > { %p1269_p11 = scmp.ne.s32.totalorder %s1265_s7, 0 }
  0x38   : > { %s1089_s15 = scalar_lea.hbm %s1268_s0, %s1257_s11  ;;  %s834_s24 = scalar_lea.hbm %s1268_s0, 512 }
  0x39   : > { %s829_s13 = scalar_lea.hbm %s1089_s15, 128  ;;  %p831_p12 = pneg %p1269_p11 }
  0x3a   : > { %p830_p8 = scmp.ne.s32.totalorder %s1089_s15, %s829_s13  ;;  %p835_p1 = scmp.lt.u32.totalorder %s1089_s15, %s1268_s0 }
  0x3b   : > { %p836_p2 = scmp.lt.u32.totalorder %s834_s24, %s829_s13  ;;  %p838_p5 = scmp.lt.u32.totalorder %s829_s13, %s1089_s15 }
  0x3c   : > { %p832_p13 = pnand %p831_p12, %p830_p8 }
  0x3d   : > { %p837_p4 = por %p836_p2, %p835_p1 }
  0x3e   : > { %p833_p0 = pneg %p832_p13 }
  0x3f   : > { %p839_p7 = por %p838_p5, %p837_p4 }
  0x41   : > { %p840_p9 = pnand %p839_p7, %p833_p0 }
  0x43   : > { %843 = shalt.err (!%p840_p9)
}
  0x44   : > { %s844_s25 = scalar_lea.vmem %s1097_s16, 128  ;;  %s953_s10 = smov [#allocation2]  }
  0x45   : > { %p845_p10 = scmp.ne.s32.totalorder %s1097_s16, %s844_s25  ;;  %s849_s6 = sshll.u32 %s953_s10, 4  ;;  %s850_s6 = int_to_ptr.vmem [resolvable:$false] %s849_s6 }
  0x46   : > { %s851_s11 = scalar_lea.vmem %s850_s6, 256  ;;  %p852_p8 = scmp.lt.s32.totalorder %s1097_s16, %s850_s6 }
  0x47   : > { %p847_p3 = pnand %p845_p10, %p831_p12  ;;  %p853_p13 = scmp.lt.s32.totalorder %s851_s11, %s844_s25 }
  0x49   : > { %p848_p6 = pneg %p847_p3  ;;  %p854_p1 = por %p853_p13, %p852_p8 }
  0x4b   : > { %p855_p2 = pnand %p854_p1, %p848_p6 }
  0x4d   : > { %858 = shalt.err (!%p855_p2)
}
  0x4e   : > { %s954_s24 = smov 128   ;;  %s1270_s13 = sshll.u32 %s944_s22, 8 }
  0x4f   : > { %732 = dma.hbm_to_vmem [thread:$0]  (!%p1269_p11), %s1089_s15, 128, %s1097_s16, %s1099_s9, %s954_s24, %s951_s17, %s952_s18  }
  0x50   : > { %s565_s25 = scalar_lea.hbm %s1246_s1, %s1270_s13  ;;  %s248_s10 = scalar_lea.vmem [#allocation4], %s1080_s12 }
  0x51   : > { %s257_s6 = sshll.u32 %s248_s10, 4  ;;  %s1136_s11 = scalar_lea.hbm %s565_s25, 64  ;;  %s1138_s6 = int_to_ptr.vmem [resolvable:$true] %s257_s6 }
  0x52   : > { %s244_s0 = sand.u32 1, %s948_s23   ;;  %s889_s8 = scalar_lea.hbm %s565_s25, 192 }
  0x53   : > { %s1141_s2 = scalar_lea.sflag [#allocation5], %s244_s0  ;;  %p860_p0 = scmp.ne.s32.totalorder %s1136_s11, %s889_s8 }
  0x54   : > { %s864_s12 = scalar_lea.hbm %s1246_s1, 512  ;;  %p865_p7 = scmp.lt.u32.totalorder %s1136_s11, %s1246_s1 }
  0x55   : > { %p862_p4 = pnand %p860_p0, %p831_p12  ;;  %p866_p9 = scmp.lt.u32.totalorder %s864_s12, %s889_s8 }
  0x56   : > { %p868_p3 = scmp.lt.u32.totalorder %s889_s8, %s1136_s11 }
  0x57   : > { %p863_p5 = pneg %p862_p4  ;;  %p867_p10 = por %p866_p9, %p865_p7 }
  0x59   : > { %p869_p6 = por %p868_p3, %p867_p10 }
  0x5b   : > { %p870_p8 = pnand %p869_p6, %p863_p5 }
  0x5d   : > { %873 = shalt.err (!%p870_p8)
}
  0x5e   : > { %s874_s0 = scalar_lea.vmem %s1138_s6, 128  ;;  %s955_s14 = smov [#allocation4]  }
  0x5f   : > { %p875_p13 = scmp.ne.s32.totalorder %s1138_s6, %s874_s0  ;;  %s879_s30 = sshll.u32 %s955_s14, 4  ;;  %s880_s30 = int_to_ptr.vmem [resolvable:$false] %s879_s30 }
  0x60   : > { %s881_s25 = scalar_lea.vmem %s880_s30, 256  ;;  %p882_p0 = scmp.lt.s32.totalorder %s1138_s6, %s880_s30 }
  0x61   : > { %p877_p1 = pnand %p875_p13, %p831_p12  ;;  %p883_p4 = scmp.lt.s32.totalorder %s881_s25, %s874_s0 }
  0x63   : > { %p878_p2 = pneg %p877_p1  ;;  %p884_p7 = por %p883_p4, %p882_p0 }
  0x65   : > { %p885_p9 = pnand %p884_p7, %p878_p2 }
  0x67   : > { %888 = shalt.err (!%p885_p9)
}
  0x68   : > { %735 = dma.hbm_to_vmem [thread:$0]  (!%p1269_p11), %s1136_s11, 128, %s1138_s6, %s1141_s2, %s954_s24, %s951_s17, %s952_s18  }
  0x69   : > { %p1271_p12 = scmp.ne.s32.totalorder %s1263_s28, 0 }
  0x6a   : > { %s271_s8 = sand.u32 (!%p1271_p12), 1, %s932_s19   ;;  %p1272_p5 = scmp.ne.s32.totalorder (!%p1271_p12), %s1262_s27, 0 }
  0x6b   : > { %269 = sbr.rel (%p1271_p12) target bundleno = 900 (0x384), region = 32  ;;  %s683_s10 = sshll.u32 (!%p1271_p12), %s271_s8, 3 }
  0x6c   : > { %s272_s15 = scalar_lea.sflag (!%p1271_p12), [#allocation3], %s271_s8  ;;  %s275_s16 = scalar_lea.vmem (!%p1271_p12), [#allocation2], %s683_s10 }
  0x72   : > { %915 = dma.done.wait (%p1272_p5), %s272_s15, 128  }
  0x73   : > { %917 = vsyncadd (%p1272_p5), %s272_s15, 4294967168  ;;  %s1273_s7 = sadd.s32 4294967295, %s948_s23   ;;  %s284_s2 = scalar_lea.vmem [#allocation4], %s683_s10 }
  0x74   : > { %s280_s12 = sand.u32 1, %s1273_s7  }
  0x75   : > { %s281_s9 = scalar_lea.sflag [#allocation5], %s280_s12 }
  0x76   : > { %919 = dma.done.wait (%p1272_p5), %s281_s9, 128  }
  0x77   : > { %921 = vsyncadd (%p1272_p5), %s281_s9, 4294967168  ;;  %p1274_p11 = scmp.ne.s32.totalorder %s1261_s26, 0 }
  0x79   : > { %923 = dma.done.wait (%p1274_p11), [#allocation5], 128  }
  0x7a   : > { %925 = vsyncadd (%p1274_p11), [#allocation5], 4294967168  ;;  %v956_v0 = vmov 0.0   ;;  %vm957_vm0 = vmmov 0   ;;  %v798_v1 = vld [vmem:[%s275_s16] sm:$0xff]   ;;  %s958_s28 = smov 124   ;;  %v428_v10 = vlaneseq }
  0x7b   : > { %707 = vmatprep.subr.bf16.mxu0 %v956_v0  ;;  %713 = vmatprep.mubr.msk.bf16.mxu0 %vm957_vm0, %v956_v0  ;;  %s959_s17 = smov 126   ;;  %v799_v2 = vld [vmem:[%s284_s2] sm:$0xff]   ;;  %vm366_vm1 = vcmask 1031168   ;;  %vm373_vm2 = vcmask 1014784   ;;  %v800_v9 = vld [vmem:[#allocation6] sm:$0xff]   ;;  %vm383_vm3 = vcmask 392192  }
  0x7c   : > { %369 = vrot.lane.b32.xlu1 %v798_v1, %s958_s28  ;;  %362 = vrot.lane.b32.xlu0 %v798_v1, %s959_s17  ;;  %v429_v11 = vand.u32 127, %v428_v10  ;;  %p331_p10 = scmp.lt.s32.totalorder %s940_s21, 1  ;;  %vm447_vm5 = vcmask 7168   ;;  %v960_v18 = vmov 0  }
  0x7d   : > { %708 = vmatpush3.bf16.msra.mxu0 %v798_v1  ;;  %796 = vset.pattern.permute.xlu0 %v960_v18 }
  0x7e   : > { %709 = vmatprep.subr.bf16.mxu0 %v956_v0  ;;  %vm433_vm4 = vcmp.lt.s32.totalorder %v429_v11, 32  ;;  %s1284_s21 = smov (!%p331_p10, %s940_s21), 1  ;;  %797 = vset.pattern.permute.xlu1 %v960_v18 }
  0x7f   : > { %s700_s26 = sshll.u32 %s1284_s21, 4 }
  0x80   : > { %371 = vrot.lane.b32.xlu1 %v799_v2, %s958_s28  ;;  %364 = vrot.lane.b32.xlu0 %v799_v2, %s959_s17  ;;  %s1193_s24 = scalar_lea.vmem %s1249_s4, %s700_s26  ;;  %s1198_s13 = scalar_lea.vmem %s1250_s5, %s700_s26 }
  0x81   : > { %450 = vst.msk [vmem:[%s1193_s24] sm:$0xff] %vm447_vm5, %v956_v0  ;;  %451 = vst.msk [vmem:[%s1193_s24 + $0x8] sm:$0xff] %vm447_vm5, %v956_v0  ;;  %s335_s14 = scalar_lea.vmem %s1248_s3, %s700_s26 }
  0x82   : > { %452 = vst.msk [vmem:[%s1198_s13] sm:$0xff] %vm447_vm5, %v956_v0  ;;  %453 = vst.msk [vmem:[%s1198_s13 + $0x8] sm:$0xff] %vm447_vm5, %v956_v0 }
  0x88   : > { %v470_v33 = vld [vmem:[%s1193_s24] sm:$0xff]  ;;  %v471_v35 = vld [vmem:[%s1193_s24 + $0x8] sm:$0xff] }
  0x89   : > { %v481_v38 = vld [vmem:[%s1198_s13] sm:$0xff]  ;;  %v482_v42 = vld [vmem:[%s1198_s13 + $0x8] sm:$0xff] }
  0xee   : > { %v370_v3 = vpop.permute.xlu1 %369  ;;  %v363_v4 = vpop.permute.xlu0 %362 }
  0xf2   : > { %v365_v5 = vpop.permute.xlu0 %364  ;;  %v372_v7 = vpop.permute.xlu1 %371 }
  0xf3   : > { %v367_v6 = vsel %vm366_vm1, %v363_v4, %v365_v5  ;;  %v374_v8 = vsel %vm373_vm2, %v370_v3, %v372_v7 }
  0xf4   : > { %710 = vmatpush3.bf16.msra.mxu0 %v367_v6 }
  0xf5   : > { %711 = vmatprep.subr.bf16.mxu0 %v956_v0 }
  0xf8   : > { %712 = vmatpush3.bf16.msra.mxu0 %v374_v8 }
  0xfb   : > { %714 = vmatmul.mubr.msk.bf16.vlgmr.msra.gmra.mrb[0].mxu0 %vm383_vm3, %v800_v9 }
 0x1ce   : > { %v421_v12 = vpop.f32.mrb[0].mxu0 }
 0x1cf   : > { %v715_v13 = vpop.f32.mrb[1].mxu0  ;;  %v438_v14 = vsel %vm433_vm4, %v421_v12, 0.0 }
 0x1d0   : > { %440 = vadd.xlane.f32.xlu0 %v438_v14  ;;  %v424_v15 = vpop.f32.mrb[2].mxu0 }
 0x1d1   : > { %v716_v16 = vpop.f32.mrb[3].mxu0  ;;  %v439_v17 = vsel %vm433_vm4, %v424_v15, 0.0 }
 0x1d2   : > { %442 = vadd.xlane.f32.xlu1 %v439_v17 }
 0x25d   : > { %v441_v19 = vpop.xlane.xlu0 %440 }
 0x25e   : > { %v445_v20 = vmul.f32 0.03125, %v441_v19 }
 0x25f   : > { %v443_v21 = vpop.xlane.xlu1 %442 }
 0x260   : > { %v446_v22 = vmul.f32 0.03125, %v443_v21  ;;  %448 = vst.msk [vmem:[%s335_s14] sm:$0xff] %vm447_vm5, %v445_v20 }
 0x262   : > { %449 = vst.msk [vmem:[%s335_s14 + $0x8] sm:$0xff] %vm447_vm5, %v446_v22 }
 0x267   : > { %v454_v23 = vld [vmem:[%s335_s14] sm:$0xff] }
 0x268   : > { %458 = vperm.xlu0 %796, %v454_v23  }
 0x269   : > { %v455_v24 = vld [vmem:[%s335_s14 + $0x8] sm:$0xff] }
 0x26a   : > { %463 = vperm.xlu1 %797, %v455_v24  }
 0x2e7   : > { %v459_v25 = vpop.permute.xlu0 %458 }
 0x2e8   : > { %v466_v26 = vsub.f32 %v421_v12, %v459_v25 }
 0x2e9   : > { %v464_v27 = vpop.permute.xlu1 %463 }
 0x2ea   : > { %v467_v28 = vsub.f32 %v424_v15, %v464_v27  ;;  %v468_v29 = vsel %vm433_vm4, %v466_v26, 0.0 }
 0x2eb   : > { %472 = vadd.xlane.f32.xlu1 %v468_v29  ;;  %v483_v31 = vmul.f32 %v468_v29, %v468_v29 }
 0x2ec   : > { %v469_v30 = vsel %vm433_vm4, %v467_v28, 0.0 }
 0x2ed   : > { %474 = vadd.xlane.f32.xlu0 %v469_v30  ;;  %v484_v32 = vmul.f32 %v469_v30, %v469_v30 }
 0x2ef   : > { %485 = vadd.xlane.f32.xlu1 %v483_v31 }
 0x2f3   : > { %487 = vadd.xlane.f32.xlu1 %v484_v32 }
 0x378   : > { %v473_v34 = vpop.xlane.xlu1 %472 }
 0x379   : > { %v476_v36 = vadd.f32 %v473_v34, %v470_v33 }
 0x37a   : > { %v475_v37 = vpop.xlane.xlu0 %474 }
 0x37b   : > { %479 = vst.msk [vmem:[%s1193_s24] sm:$0xff] %vm447_vm5, %v476_v36  ;;  %v477_v39 = vadd.f32 %v475_v37, %v471_v35 }
 0x37c   : > { %v486_v40 = vpop.xlane.xlu1 %485 }
 0x37d   : > { %480 = vst.msk [vmem:[%s1193_s24 + $0x8] sm:$0xff] %vm447_vm5, %v477_v39  ;;  %v489_v41 = vadd.f32 %v486_v40, %v481_v38 }
 0x37f   : > { %491 = vst.msk [vmem:[%s1198_s13] sm:$0xff] %vm447_vm5, %v489_v41 }
 0x380   : > { %v488_v43 = vpop.xlane.xlu1 %487 }
 0x381   : > { %v490_v44 = vadd.f32 %v488_v43, %v482_v42 }
 0x383   : > { %492 = vst.msk [vmem:[%s1198_s13 + $0x8] sm:$0xff] %vm447_vm5, %v490_v44 }
 0x384 PF: > { %s22_s23 = sadd.s32 1, %s948_s23   ;;  %s1275_s30 = sld [smem:[#allocation10_spill]] }
 0x385   : > { %p19_p3 = scmp.ge.s32.totalorder %s22_s23, 4   ;;  %s1276_s18 = smov %s932_s19 }
 0x386   : > { %s1277_s19 = smov %s936_s20  ;;  %s1278_s20 = smov %s1095_s29 }
 0x387   : > { %s1279_s21 = smov %s944_s22  ;;  %21 = sbr.rel (!%p19_p3) target bundleno = 9 (0x9), region = 117 }
 0x38a   : > { %s1280_s22 = smov %s1275_s30 }
 0x38e   :  { %546 = vsyncpa [#allocation3], 1 }
 0x38f   :  { %548 = vsyncpa [#allocation3 + $0x1], 1 }
 0x390   :  { %549 = vsyncpa [#allocation5], 1 }
 0x391   :  { %551 = vsyncpa [#allocation5 + $0x1], 1 }

</bundles_post_ra>
